<compile_context>
chip_gen: v5e
topology: v5e:2x2
jax: 0.10.0
libtpu: 0.0.40
codegen_flags: <defaults>
</compile_context>

<pallas_src>
import random

import jax
import jax.numpy as jnp
from jax.experimental import pallas as pl
from jax.experimental.pallas import tpu as pltpu


def _gather_channel_kernel(perm_ref, x_ref, o_ref):
    # The data-dependent channel selection happens entirely in the input
    # BlockSpec index_map (via the scalar-prefetched permutation table); the
    # body is a pure copy of one (N, 1, H, W) channel plane.
    del perm_ref
    o_ref[...] = x_ref[...]


def permute_channels(x: jax.Array, perm: jax.Array) -> jax.Array:
    """out[:, i, :, :] = x[:, perm[i], :, :] via a scalar-prefetch DMA gather."""
    N, C, H, W = x.shape
    perm = perm.astype(jnp.int32)

    return pl.pallas_call(
        _gather_channel_kernel,
        out_shape=jax.ShapeDtypeStruct((N, C, H, W), x.dtype),
        grid_spec=pltpu.PrefetchScalarGridSpec(
            num_scalar_prefetch=1,
            grid=(C,),
            in_specs=[
                # For output channel i, fetch input channel perm[i].
                pl.BlockSpec((N, 1, H, W), lambda i, perm_ref: (0, perm_ref[i], 0, 0)),
            ],
            out_specs=pl.BlockSpec((N, 1, H, W), lambda i, perm_ref: (0, i, 0, 0)),
        ),
        compiler_params=pltpu.CompilerParams(
            dimension_semantics=("parallel",),
        ),
    )(perm, x)


class PermuteJAX:
    """JAX/Pallas counterpart of the PyTorch `Permute(InvertibleModule)`."""

    def __init__(self, dim: int, seed: int = 0):
        # Deterministic channel permutation (mirrors random.shuffle in torch).
        ids = list(range(dim))
        random.Random(seed).shuffle(ids)

        # Keep the permutation matrices for fidelity with the reference module.
        p = jnp.zeros((dim, dim), jnp.float32)
        p = p.at[jnp.arange(dim), jnp.asarray(ids)].set(1.0)
        self.P = p                       # forward weight (F.linear(x, P))
        self.inv_P = p.T                 # inverse weight

        # Index-vector equivalents consumed by the Pallas kernel.
        self.perm = jnp.asarray(ids, dtype=jnp.int32)          # fwd: out ch i <- in ch ids[i]
        inv = [0] * dim
        for j, v in enumerate(ids):
            inv[v] = j
        self.inv_perm = jnp.asarray(inv, dtype=jnp.int32)      # bwd gather indices

    def build(self):
        pass

    def forward(self, x, logv):
        return permute_channels(x, self.perm), logv

    def backward(self, x):
        return permute_channels(x, self.inv_perm)

    def inverse(self, x):
        return self.backward(x)

    def __call__(self, x, logv):
        return self.forward(x, logv)


if __name__ == "__main__":
    key = jax.random.PRNGKey(0)
    kx, kl = jax.random.split(key)
    # NCHW: batch=2, channels=4, spatial=16x16
    x = jax.random.normal(kx, (2, 4, 16, 16), dtype=jnp.float32)
    logv = jax.random.normal(kl, (2,), dtype=jnp.float32)

    mod = PermuteJAX(dim=4, seed=0)

    y, logv_out = mod(x, logv)
    y = jax.block_until_ready(y)

    # Reference: exactly the PyTorch forward (NHWC, F.linear with P, back to NCHW).
    x_nhwc = jnp.transpose(x, (0, 2, 3, 1))
    ref = jnp.transpose(x_nhwc @ mod.P.T, (0, 3, 1, 2))

    assert y.shape == x.shape and y.dtype == x.dtype
    assert jnp.allclose(y, ref), "forward does not match F.linear(permute) reference"
    assert jnp.allclose(logv_out, logv), "logv must pass through unchanged"

    # Invertibility: backward(forward(x)) == x.
    z = jax.block_until_ready(mod.backward(y))
    assert jnp.allclose(z, x), "backward is not the inverse of forward"

    print("KERNEL_OK")
</pallas_src>

<mosaic_0001>
module attributes {stable_mosaic.version = 11 : i64} {
  func.func @_gather_channel_kernel(%arg0: i32, %arg1: memref<4xi32, #tpu.memory_space<smem>>, %arg2: memref<2x1x16x16xf32, #tpu.memory_space<vmem>>, %arg3: memref<2x1x16x16xf32, #tpu.memory_space<vmem>>) attributes {dimension_semantics = [#tpu.dimension_semantics<parallel>], iteration_bounds = array<i64: 4>, scalar_prefetch = 1 : i64, scratch_operands = 0 : i64, tpu.core_type = #tpu.core_type<tc>, window_params = [{transform_indices = @transform_0, window_bounds = array<i64: 2, 1, 16, 16>}, {transform_indices = @transform_1, window_bounds = array<i64: 2, 1, 16, 16>}]} {
    %c0 = arith.constant 0 : index
    %c0_0 = arith.constant 0 : index
    %c0_1 = arith.constant 0 : index
    %c0_2 = arith.constant 0 : index
    %0 = vector.load %arg2[%c0, %c0_0, %c0_1, %c0_2] : memref<2x1x16x16xf32, #tpu.memory_space<vmem>>, vector<2x1x16x16xf32>
    %c0_3 = arith.constant 0 : index
    %c0_4 = arith.constant 0 : index
    %c0_5 = arith.constant 0 : index
    %c0_6 = arith.constant 0 : index
    %1 = vector.load %arg3[%c0_3, %c0_4, %c0_5, %c0_6] : memref<2x1x16x16xf32, #tpu.memory_space<vmem>>, vector<2x1x16x16xf32>
    tpu.vector_store %arg3[%c0_3, %c0_4, %c0_5, %c0_6], %0 {strides = array<i32>} : memref<2x1x16x16xf32, #tpu.memory_space<vmem>>, vector<2x1x16x16xf32>,
    return
  }
  func.func @transform_0(%arg0: i32, %arg1: memref<4xi32, #tpu.memory_space<smem>>) -> (i32, i32, i32, i32) {
    %0 = arith.index_cast %arg0 : i32 to index
    %1 = memref.load %arg1[%0] : memref<4xi32, #tpu.memory_space<smem>>
    %c0_i32 = arith.constant 0 : i32
    %c0_i32_0 = arith.constant 0 : i32
    %c0_i32_1 = arith.constant 0 : i32
    %c0_i32_2 = arith.constant 0 : i32
    return %c0_i32, %1, %c0_i32_0, %c0_i32_1 : i32, i32, i32, i32
  }
  func.func @transform_1(%arg0: i32, %arg1: memref<4xi32, #tpu.memory_space<smem>>) -> (i32, i32, i32, i32) {
    %c0_i32 = arith.constant 0 : i32
    %c0_i32_0 = arith.constant 0 : i32
    %c0_i32_1 = arith.constant 0 : i32
    %c0_i32_2 = arith.constant 0 : i32
    return %c0_i32, %arg0, %c0_i32_0, %c0_i32_1 : i32, i32, i32, i32
  }
}

</mosaic_0001>

<bundles_post_ra>
// kernel: tpu_custom_call.1
= control target key start
LH: loop header
LB: loop body
LE: loop exit
PB: predicated region body
PF: predicated region fallthrough
CT: control target
= control target key end

     0   :  { %s486_s12 = smov [#allocation3]   ;;  %s674_s0 = inlined_call_operand.hbm [shape: s32[4], index: 0, kind: input, shape index: {}]   ;;  %s675_s1 = inlined_call_operand.hbm [shape: f32[2,4,16,16], index: 1, kind: input, shape index: {}]   ;;  %s676_s2 = inlined_call_operand.hbm [shape: f32[2,4,16,16], index: 2, kind: output, shape index: {}]  }
   0x1   :  { %s8_s11 = sshll.u32 %s674_s0, 4  ;;  %s9_s11 = int_to_ptr.hbm [resolvable:$true] %s8_s11 }
   0x2   :  { %11 = dma.hbm_to_smem %s9_s11, 16, %s486_s12, [#allocation2] }
   0x3   :  { %448 = dma.done.wait [#allocation2], 16 }
   0x4   :  { %449 = vsyncadd [#allocation2], 4294967280 }
   0x5   :  { %14 = sfence }
   0x6   :  { %15 = vsyncpa [#allocation5], 0 }
   0x7   :  { %17 = vsyncpa [#allocation5 + $0x1], 0 }
   0x8   :  { %18 = vsyncpa [#allocation6], 0 }
   0x9   :  { %20 = vsyncpa [#allocation6 + $0x1], 0  ;;  %s518_s13 = smov 0   ;;  %s520_s14 = smov 0  }
   0xa   :  { %s522_s15 = smov 0   ;;  %s524_s16 = smov 0  }
   0xb   :  { %s526_s17 = smov 0   ;;  %s528_s0 = smov 0  }
   0xc   :  { %s530_s18 = smov 0  }
   0xd LB: > { %s552_s19 = sadd.s32 4294967295, %s484_s18   ;;  %s296_s20 = sadd.s32 4294967294, %s484_s18   ;;  %s484_s18 = sphi %s530_s18, %s689_s18   ;;  %s480_s0 = sphi %s528_s0, %s688_s0   ;;  %s476_s17 = sphi %s526_s17, %s687_s17   ;;  %s472_s16 = sphi %s524_s16, %s686_s16   ;;  %s468_s15 = sphi %s522_s15, %s685_s15   ;;  %s464_s14 = sphi %s520_s14, %s684_s14   ;;  %s460_s13 = sphi %s518_s13, %s683_s13  }
   0xe   : > { %s556_s21 = sadd.s32 1, %s484_s18   ;;  %s30_s22 = sld [smem:[#allocation3 + %s484_s18]] }
   0xf   : > { %s31_s23 = sld [smem:[#allocation3 + %s556_s21]]  ;;  %s35_s24 = sadd.s32 1, %s480_s0 }
  0x10   : > { %p42_p0 = scmp.ne.s32.totalorder %s480_s0, %s476_s17  ;;  %p43_p1 = scmp.eq.s32.totalorder %s484_s18, 0 }
  0x11   : > { %p48_p2 = scmp.ne.s32.totalorder %s476_s17, %s472_s16  ;;  %p49_p3 = scmp.eq.s32.totalorder %s552_s19, 0 }
  0x12   : > { %p566_p4 = por %p43_p1, %p42_p0  ;;  %s58_s26 = ssub.s32 %s484_s18, %s556_s21 }
  0x13   : > { %p572_p5 = por %p49_p3, %p48_p2  ;;  %p59_p6 = scmp.eq.s32.totalorder %s58_s26, 0 }
  0x14   : > { %s61_s28 = sadd.s32 1, %s468_s15  ;;  %p71_p7 = scmp.ne.s32.totalorder %s468_s15, %s464_s14 }
  0x15   : > { %s32_s29 = ssub.s32 %s30_s22, %s31_s23  ;;  %p72_p8 = scmp.eq.s32.totalorder %s552_s19, 3 }
  0x16   : > { %p33_p9 = scmp.eq.s32.totalorder %s32_s29, 0  ;;  %p77_p10 = scmp.ne.s32.totalorder %s464_s14, %s460_s13 }
  0x17   : > { %s583_s30 = scalar_select %p59_p6, %s468_s15, %s61_s28  }
  0x18   : > { %s586_s3 = scalar_select %p33_p9, %s480_s0, %s35_s24  }
  0x19   : > { %p588_p11 = por %p72_p8, %p71_p7  ;;  %p78_p12 = scmp.eq.s32.totalorder %s296_s20, 3 }
  0x1a   : > { %679 = sst [smem:[#allocation17_spill]] %s586_s3  ;;  %p298_p0 = scmp.ge.s32.totalorder %s484_s18, 4 }
  0x1b   : > { %p592_p13 = por %p78_p12, %p77_p10 }
  0x1c   : > { %94 = sbr.rel (%p298_p0) target bundleno = 49 (0x31), region = 16 }
  0x21   : > { %s98_s6 = sand.u32 1, %s480_s0   ;;  %s487_s8 = smov 1024  }
  0x22   : > { %s299_s7 = sshll.u32 %s98_s6, 5  ;;  %317 = sst [smem:[#allocation9]] (%p566_p4), %s487_s8 }
  0x23   : > { %s314_s9 = scalar_select %p566_p4, [#allocation3], [#allocation12] }
  0x24   : > { %s315_s10 = scalar_select %p566_p4, %s484_s18, 0 }
  0x25   : > { %s316_s11 = scalar_select %p566_p4, [#allocation0], [#allocation13] }
  0x26   : > { %s103_s12 = sld [smem:[%s314_s9 + %s315_s10]]  ;;  %s102_s16 = scalar_lea.vmem [#allocation4], %s299_s7 }
  0x27   : > { %s123_s20 = sshll.u32 %s102_s16, 4  ;;  %s113_s22 = sld [smem:[%s316_s11]]   ;;  %s124_s20 = int_to_ptr.vmem [resolvable:$true] %s123_s20 }
  0x28   : > { %s488_s23 = smov 256   ;;  %s489_s24 = smov 2  }
  0x29   : > { %318 = sst [smem:[#allocation9 + $0x1]] (%p566_p4), %s488_s23  ;;  %s490_s26 = smov 128  }
  0x2a   : > { %319 = sst [smem:[#allocation9 + $0x2]] (%p566_p4), %s489_s24  ;;  %s491_s16 = smov 8  }
  0x2b   : > { %320 = sst [smem:[#allocation9 + $0x3]] (%p566_p4), %s490_s26  ;;  %s99_s23 = scalar_lea.sflag [#allocation5], %s98_s6 }
  0x2c   : > { %s312_s28 = sshll.u32 %s103_s12, 4  ;;  %321 = sst [smem:[#allocation9 + $0x4]] (%p566_p4), %s490_s26 }
  0x2d   : > { %s108_s7 = scalar_lea.hbm %s675_s1, %s312_s28  ;;  %s302_s9 = sshll.u32 %s113_s22, 26 }
  0x2e   : > { %s303_s10 = sadd.s32 134217728, %s302_s9  ;;  %s121_s11 = sshll.u32 %s108_s7, 4  ;;  %s122_s11 = int_to_ptr.hbm [resolvable:$true] %s121_s11 }
  0x2f   : > { %322 = sst [smem:[#allocation9 + $0x5]] (%p566_p4), %s491_s16  ;;  %s492_s3 = smov [#allocation8]  }
  0x30   : > { %323 = dma.general (%p566_p4), %s122_s11, 512, %s124_s20, %s99_s23, %s492_s3, [#allocation9], %s303_s10, 0  }
  0x31 PF: > { %p304_p1 = scmp.ge.s32.totalorder %s484_s18, 1  ;;  %p144_p2 = scmp.lt.s32.totalorder %s484_s18, 5 }
  0x33   : > { %p145_p3 = pnand %p304_p1, %p144_p2 }
  0x34   : > { %s150_s12 = sand.u32 (!%p145_p3), 1, %s476_s17  }
  0x35   : > { %148 = sbr.rel (%p145_p3) target bundleno = 76 (0x4c), region = 24  ;;  %s305_s22 = sshll.u32 (!%p145_p3), %s150_s12, 5 }
  0x36   : > { %s151_s24 = scalar_lea.sflag (!%p145_p3), [#allocation5], %s150_s12  ;;  %s154_s26 = scalar_lea.vmem (!%p145_p3), [#allocation4], %s305_s22 }
  0x3a   : > { %451 = dma.done.wait (%p572_p5), %s151_s24, 512  }
  0x3b   : > { %453 = vsyncadd (%p572_p5), %s151_s24, 4294966784  ;;  %s171_s25 = sand.u32 1, %s464_s14   ;;  %vm179_vm0 = vcmask 130048   ;;  %v175_v0 = vld [vmem:[%s154_s26] sm:$0xff]  ;;  %v176_v1 = vld [vmem:[%s154_s26 + $0x8] sm:$0xff] }
  0x3c   : > { %s306_s3 = sshll.u32 %s171_s25, 5  ;;  %v177_v2 = vld [vmem:[%s154_s26 + $0x10] sm:$0xff]  ;;  %v178_v3 = vld [vmem:[%s154_s26 + $0x18] sm:$0xff]  ;;  %s185_s20 = scalar_lea.sflag [#allocation6], %s171_s25 }
  0x3d   : > { %s173_s6 = scalar_lea.vmem [#allocation7], %s306_s3 }
  0x3e   : > { %180 = vst.msk [vmem:[%s173_s6] sm:$0xff] %vm179_vm0, %v175_v0 }
  0x3f   : > { %181 = vst.msk [vmem:[%s173_s6 + $0x8] sm:$0xff] %vm179_vm0, %v176_v1 }
  0x40   : > { %182 = vst.msk [vmem:[%s173_s6 + $0x10] sm:$0xff] %vm179_vm0, %v177_v2 }
  0x41   : > { %183 = vst.msk [vmem:[%s173_s6 + $0x18] sm:$0xff] %vm179_vm0, %v178_v3 }
  0x42   : > { %s313_s27 = sshll.u32 %s552_s19, 4  ;;  %s207_s28 = sshll.u32 %s173_s6, 4  ;;  %s208_s28 = int_to_ptr.vmem [resolvable:$true] %s207_s28 }
  0x43   : > { %s196_s7 = scalar_lea.hbm %s676_s2, %s313_s27  ;;  %s493_s10 = smov 256  }
  0x44   : > { %s209_s9 = sshll.u32 %s196_s7, 4  ;;  %325 = sst [smem:[#allocation11]] (%p588_p11), %s493_s10  ;;  %s210_s9 = int_to_ptr.hbm [resolvable:$true] %s209_s9 }
  0x45   : > { %s494_s11 = smov 1024   ;;  %s495_s16 = smov 2  }
  0x46   : > { %326 = sst [smem:[#allocation11 + $0x1]] (%p588_p11), %s494_s11  ;;  %s496_s19 = smov 128  }
  0x47   : > { %327 = sst [smem:[#allocation11 + $0x2]] (%p588_p11), %s495_s16  ;;  %s497_s23 = smov 8  }
  0x48   : > { %328 = sst [smem:[#allocation11 + $0x3]] (%p588_p11), %s496_s19  ;;  %s498_s12 = smov [#allocation10]  }
  0x49   : > { %329 = sst [smem:[#allocation11 + $0x4]] (%p588_p11), %s496_s19  ;;  %s499_s22 = smov 0  }
  0x4a   : > { %330 = sst [smem:[#allocation11 + $0x5]] (%p588_p11), %s497_s23 }
  0x4b   : > { %331 = dma.general (%p588_p11), %s208_s28, 512, %s210_s9, %s185_s20, %s498_s12, [#allocation11], %s499_s22, 0  }
  0x4c PF: > { %p337_p4 = scmp.ge.s32.totalorder %s484_s18, 2  ;;  %s237_s24 = sand.u32 1, %s460_s13  }
  0x4d   : > { %s238_s26 = scalar_lea.sflag [#allocation6], %s237_s24 }
  0x4e   : > { %p334_p5 = pnand %p337_p4, %p592_p13 }
  0x50   : > { %p335_p6 = pneg %p334_p5 }
  0x52   : > { %455 = dma.done.wait (%p335_p6), %s238_s26, 512  }
  0x53   : > { %457 = vsyncadd (%p335_p6), %s238_s26, 4294966784  ;;  %s682_s4 = sld [smem:[#allocation17_spill]]  ;;  %p23_p7 = scmp.ge.s32.totalorder %s556_s21, 6  }
  0x54   : > { %s683_s13 = smov %s464_s14  ;;  %s684_s14 = smov %s468_s15 }
  0x55   : > { %s685_s15 = smov %s583_s30  ;;  %s686_s16 = smov %s476_s17 }
  0x56   : > { %s687_s17 = smov %s480_s0  ;;  %s689_s18 = smov %s556_s21 }
  0x57   :  { %25 = sbr.rel (!%p23_p7) target bundleno = 13 (0xd), region = 79 }
  0x59   : > { %s688_s0 = smov %s682_s4 }
  0x5c   :  { %244 = vsyncpa [#allocation5], 1 }
  0x5d   :  { %246 = vsyncpa [#allocation5 + $0x1], 1 }
  0x5e   :  { %247 = vsyncpa [#allocation6], 1 }
  0x5f   :  { %249 = vsyncpa [#allocation6 + $0x1], 1 }

</bundles_post_ra>
